<compile_context>
chip_gen: v7x
topology: tpu7x:2x2x1
jax: 0.10.0
libtpu: 0.0.40
codegen_flags: <defaults>
</compile_context>

<pallas_src>
import functools

import numpy as np
import jax
import jax.numpy as jnp
from jax.experimental import pallas as pl
from jax.experimental.pallas import tpu as pltpu

BAG_SIZE = 32   # config.BAG_SIZE
CLASSES = 4     # config.CLASSES
F_SUB = 16      # sub-bag item feature length
F_TOP = 64      # parent feature length; cols [0, BAG) are overwritten by sub agg
BN_EPS = 1e-5   # torch.nn.BatchNorm1d default
LANE = 128      # TPU lane width; every feature axis is padded to this

_BIAS_LANE = 127       # constant-1 lane (bias folding + real-row mask)
_ITEMW_LANE = 126      # per-item segment weight lane (1/len, 0 for padding)

# bf16 weight slab rows (each weight block padded to 128x128; bias in row 127)
_W1S_R = 0             # rows [  0,128): sub-bag Linear weight, b1s in row 127
_W1_R = 128            # rows [128,256): parent Linear weight,  b1  in row 255
_W2_R = 256            # rows [256,384): classifier weight,     b2  in row 383
_W_SLAB_ROWS = 384

# f32 BN-vector slab rows
_GS_ROW, _BS_ROW, _G1_ROW, _BE1_ROW = 0, 1, 2, 3
_VEC_ROWS = 8


def _net_kernel(sub_x_ref, top_ref, w_ref, vec_ref, out_ref, agg_ref,
                *, n_real, tn, maxb):
    f32 = jnp.float32
    bf16 = jnp.bfloat16
    i = pl.program_id(0)

    # ---- streaming phase (every grid step): sub-bag Linear -> ReLU -> weighted
    #      segment sum for this tile of `tn` parent samples (maxb items each).
    sx = sub_x_ref[...]                                     # (tn*maxb, 128) f32
    w1s = w_ref[_W1S_R:_W1S_R + LANE, :]                    # bf16, b1s folded in row 127
    h = jnp.maximum(
        jnp.dot(sx.astype(bf16), w1s, preferred_element_type=f32), 0.0)
    item_w = sx[:, _ITEMW_LANE:_ITEMW_LANE + 1]             # (tn*maxb, 1): 1/len or 0
    agg_ref[i] = jnp.sum((h * item_w).reshape(tn, maxb, LANE), axis=1)

    # ---- epilogue (last grid step only): BN -> parent Linear/ReLU -> BN -> cls
    @pl.when(i == pl.num_programs(0) - 1)
    def _():
        inv_n = 1.0 / n_real
        A = agg_ref[...].reshape(-1, LANE)                  # (n_pad, 128), pad rows = 0

        # BatchNorm (training-mode batch stats), one-pass sum / sum-of-squares.
        mu = jnp.sum(A, axis=0, keepdims=True) * inv_n
        var = jnp.sum(A * A, axis=0, keepdims=True) * inv_n - mu * mu
        gs = vec_ref[_GS_ROW:_GS_ROW + 1, :]
        bs = vec_ref[_BS_ROW:_BS_ROW + 1, :]
        scale = gs * jax.lax.rsqrt(var + BN_EPS)
        A = A * scale + (bs - mu * scale)                   # padded lanes stay exactly 0

        # Parent BagInput: x[:, :BAG] = agg done as a lane-disjoint add
        # (agg in lanes [0,32), parent rest features in [32,64), bias in 127).
        top = top_ref[...]
        mask = top[:, _BIAS_LANE:_BIAS_LANE + 1]            # 1.0 real row / 0.0 pad row
        x = A * mask + top
        w1 = w_ref[_W1_R:_W1_R + LANE, :]                   # bf16, b1 folded in row 127
        z = jnp.maximum(
            jnp.dot(x.astype(bf16), w1, preferred_element_type=f32), 0.0)

        mu2 = jnp.sum(z, axis=0, keepdims=True) * inv_n
        var2 = jnp.sum(z * z, axis=0, keepdims=True) * inv_n - mu2 * mu2
        g1 = vec_ref[_G1_ROW:_G1_ROW + 1, :]
        be1 = vec_ref[_BE1_ROW:_BE1_ROW + 1, :]
        scale2 = g1 * jax.lax.rsqrt(var2 + BN_EPS)
        z = z * scale2 + (be1 - mu2 * scale2)               # lane 127 -> exactly 1.0

        # Classifier: b2 arrives via w2 row 127 x z lane 127 (== 1.0).
        w2 = w_ref[_W2_R:_W2_R + LANE, :]
        out_ref[...] = jnp.dot(z.astype(bf16), w2, preferred_element_type=f32)


def _pick_row_tile(n_pad, maxb, target_item_rows=2048):
    """Largest multiple-of-8 divisor of n_pad keeping the item tile modest."""
    best = None
    for cand in range(8, n_pad + 1, 8):
        if n_pad % cand == 0 and cand * maxb <= target_item_rows:
            best = cand
    if best is None:
        best = 8 if n_pad % 8 == 0 else n_pad
    return best


def net_forward(sub_x_pad, top_shift, w_slab, bn_vec, *, n_real, maxb,
                row_tile=None):
    """Whole Net forward in a single (row-tiled) Pallas call."""
    n_pad = top_shift.shape[0]
    assert sub_x_pad.shape == (n_pad * maxb, LANE)
    if row_tile is None:
        row_tile = _pick_row_tile(n_pad, maxb)
    assert row_tile % 8 == 0 and n_pad % row_tile == 0 and maxb % 8 == 0
    n_tiles = n_pad // row_tile

    kernel = functools.partial(_net_kernel, n_real=n_real, tn=row_tile, maxb=maxb)

    flops = 2 * LANE * LANE * (n_pad * maxb + 2 * n_pad)
    bytes_accessed = (sub_x_pad.size * 4 + top_shift.size * 4 +
                      w_slab.size * 2 + bn_vec.size * 4 + n_pad * LANE * 4)

    out = pl.pallas_call(
        kernel,
        out_shape=jax.ShapeDtypeStruct((n_pad, LANE), jnp.float32),
        grid=(n_tiles,),
        in_specs=[
            pl.BlockSpec((row_tile * maxb, LANE), lambda i: (i, 0)),  # streamed
            pl.BlockSpec((n_pad, LANE), lambda i: (0, 0)),            # resident
            pl.BlockSpec((_W_SLAB_ROWS, LANE), lambda i: (0, 0)),     # resident (bf16)
            pl.BlockSpec((_VEC_ROWS, LANE), lambda i: (0, 0)),        # resident (f32)
        ],
        out_specs=pl.BlockSpec((n_pad, LANE), lambda i: (0, 0)),      # lane-dense, resident
        scratch_shapes=[pltpu.VMEM((n_tiles, row_tile, LANE), jnp.float32)],
        compiler_params=pltpu.CompilerParams(
            dimension_semantics=("arbitrary",),          # last step reads all tiles' agg
            vmem_limit_bytes=32 * 1024 * 1024),
        cost_estimate=pl.CostEstimate(
            flops=int(flops), transcendentals=2 * LANE,
            bytes_accessed=int(bytes_accessed)),
    )(sub_x_pad, top_shift, w_slab, bn_vec)
    return out[:n_real, :CLASSES]


def pack_inputs(sub_x, lens, top_x, params):
    """Host-side glue: ragged bag -> per-sample padded items + packed slabs."""
    lens = np.asarray(lens, np.int64)
    n_real = int(len(lens))
    n_pad = max(8, -(-n_real // 8) * 8)
    max_len = int(lens.max()) if n_real > 0 else 0
    maxb = max(8, -(-max_len // 8) * 8)

    # per-sample padded items; 1/len in lane 126, constant 1.0 in lane 127
    sub_x = np.asarray(sub_x, np.float32).reshape(-1, F_SUB)
    sub_x_pad = np.zeros((n_pad * maxb, LANE), np.float32)
    off = 0
    for i, l in enumerate(lens):
        l = int(l)
        if l:
            r0 = i * maxb
            sub_x_pad[r0:r0 + l, :F_SUB] = sub_x[off:off + l]
            sub_x_pad[r0:r0 + l, _ITEMW_LANE] = 1.0 / l
            sub_x_pad[r0:r0 + l, _BIAS_LANE] = 1.0
            off += l

    # parent features shifted into lanes [BAG, F_TOP); lanes [0,BAG) filled by
    # the sub-bag agg inside the kernel; lane 127 = bias constant & real-row mask
    top_x = np.asarray(top_x, np.float32)
    top_shift = np.zeros((n_pad, LANE), np.float32)
    top_shift[:n_real, BAG_SIZE:F_TOP] = top_x[:, BAG_SIZE:]
    top_shift[:n_real, _BIAS_LANE] = 1.0

    # bf16 weight slab (biases folded into row 127 of each 128x128 block)
    w_slab = np.zeros((_W_SLAB_ROWS, LANE), np.float32)
    w_slab[_W1S_R:_W1S_R + F_SUB, :BAG_SIZE] = np.asarray(params["w1s"])
    w_slab[_W1S_R + _BIAS_LANE, :BAG_SIZE] = np.asarray(params["b1s"])
    w_slab[_W1_R:_W1_R + F_TOP, :BAG_SIZE] = np.asarray(params["w1"])
    w_slab[_W1_R + _BIAS_LANE, :BAG_SIZE] = np.asarray(params["b1"])
    w_slab[_W2_R:_W2_R + BAG_SIZE, :CLASSES] = np.asarray(params["w2"])
    w_slab[_W2_R + _BIAS_LANE, :CLASSES] = np.asarray(params["b2"])

    # f32 BN vectors (padded lanes must stay exactly 0; be1[127]=1 drives b2)
    bn_vec = np.zeros((_VEC_ROWS, LANE), np.float32)
    bn_vec[_GS_ROW, :BAG_SIZE] = np.asarray(params["gs"])
    bn_vec[_BS_ROW, :BAG_SIZE] = np.asarray(params["bs"])
    bn_vec[_G1_ROW, :BAG_SIZE] = np.asarray(params["g1"])
    bn_vec[_BE1_ROW, :BAG_SIZE] = np.asarray(params["be1"])
    bn_vec[_BE1_ROW, _BIAS_LANE] = 1.0

    meta = dict(n_real=n_real, n_pad=n_pad, maxb=maxb)
    return (jnp.asarray(sub_x_pad), jnp.asarray(top_shift),
            jnp.asarray(w_slab, dtype=jnp.bfloat16), jnp.asarray(bn_vec), meta)


def _bf16_round(a):
    """Round an f32 array through bf16 (emulates the kernel's MXU feeds)."""
    return np.asarray(jnp.asarray(np.asarray(a, np.float32),
                                  jnp.bfloat16).astype(jnp.float32))


def _numpy_reference(sub_x, lens, top_x, p):
    """Mirror of the PyTorch forward (cumsum seg_mean_vec, training-mode BN),
    with matmul feeds rounded through bf16 exactly like the kernel."""
    r = _bf16_round
    sub_x = np.asarray(sub_x, np.float32)
    top_x = np.asarray(top_x, np.float32)
    lens = np.asarray(lens, np.int64)
    n = len(lens)

    h = np.maximum(r(sub_x) @ r(p["w1s"]) + r(p["b1s"]), 0.0)

    agg = np.zeros((n, BAG_SIZE), np.float32)
    nz = lens != 0
    if int(lens.sum()) > 0:
        sum_idx = np.cumsum(lens) - 1
        sum_batch = np.cumsum(h, axis=0)[sum_idx][nz]
        sum_sub = np.roll(sum_batch, 1, axis=0)
        sum_sub[0] = 0.0
        agg[nz] = (sum_batch - sum_sub) / lens[nz][:, None].astype(np.float32)
    mu, var = agg.mean(0), agg.var(0)
    agg = (agg - mu) / np.sqrt(var + BN_EPS) * np.asarray(p["gs"]) + np.asarray(p["bs"])

    x = top_x.copy()
    x[:, :BAG_SIZE] = agg
    z = np.maximum(r(x) @ r(p["w1"]) + r(p["b1"]), 0.0)
    mu, var = z.mean(0), z.var(0)
    z = (z - mu) / np.sqrt(var + BN_EPS) * np.asarray(p["g1"]) + np.asarray(p["be1"])
    return r(z) @ r(p["w2"]) + r(p["b2"])


if __name__ == "__main__":
    key = jax.random.PRNGKey(0)
    ks = jax.random.split(key, 12)

    # ragged per-parent-sample sub-bag lengths (fixed at trace time)
    lens = np.array([3, 0, 5, 2, 1, 4, 0, 5, 6, 2, 0, 7, 1, 3], dtype=np.int32)
    N = int(len(lens))
    M = int(lens.sum())

    sub_x = jax.random.normal(ks[0], (M, F_SUB), jnp.float32)   # flattened bag items
    top_x = jax.random.normal(ks[1], (N, F_TOP), jnp.float32)   # parent sample feats

    # synthetic parameters (nn.Linear weights pre-transposed to (in, out))
    params = {
        "w1s": jax.random.normal(ks[2], (F_SUB, BAG_SIZE), jnp.float32) * 0.1,
        "b1s": jax.random.normal(ks[3], (BAG_SIZE,), jnp.float32) * 0.1,
        "gs":  1.0 + jax.random.normal(ks[4], (BAG_SIZE,), jnp.float32) * 0.1,
        "bs":  jax.random.normal(ks[5], (BAG_SIZE,), jnp.float32) * 0.1,
        "w1":  jax.random.normal(ks[6], (F_TOP, BAG_SIZE), jnp.float32) * 0.1,
        "b1":  jax.random.normal(ks[7], (BAG_SIZE,), jnp.float32) * 0.1,
        "g1":  1.0 + jax.random.normal(ks[8], (BAG_SIZE,), jnp.float32) * 0.1,
        "be1": jax.random.normal(ks[9], (BAG_SIZE,), jnp.float32) * 0.1,
        "w2":  jax.random.normal(ks[10], (BAG_SIZE, CLASSES), jnp.float32) * 0.1,
        "b2":  jax.random.normal(ks[11], (CLASSES,), jnp.float32) * 0.1,
    }

    sub_x_pad, top_shift, w_slab, bn_vec, meta = pack_inputs(sub_x, lens, top_x, params)

    # row_tile=8 -> 2 grid steps (N=14 pads to 16 parent rows), exercising the
    # streamed row-tiled path, the padded-row mask and the last-step epilogue.
    out = net_forward(sub_x_pad, top_shift, w_slab, bn_vec,
                      n_real=meta["n_real"], maxb=meta["maxb"], row_tile=8)
    out = jax.block_until_ready(out)

    ref = _numpy_reference(sub_x, lens, top_x, params)
    np.testing.assert_allclose(np.asarray(out), ref, rtol=5e-3, atol=5e-3)

    print("KERNEL_OK")
</pallas_src>

<mosaic_0001>
module attributes {stable_mosaic.version = 11 : i64} {
  func.func @_net_kernel(%arg0: i32, %arg1: memref<64x128xf32, #tpu.memory_space<vmem>>, %arg2: memref<16x128xf32, #tpu.memory_space<vmem>>, %arg3: memref<384x128xbf16, #tpu.memory_space<vmem>>, %arg4: memref<8x128xf32, #tpu.memory_space<vmem>>, %arg5: memref<16x128xf32, #tpu.memory_space<vmem>>, %arg6: memref<2x8x128xf32, #tpu.memory_space<vmem>>) attributes {dimension_semantics = [#tpu.dimension_semantics<arbitrary>], iteration_bounds = array<i64: 2>, scalar_prefetch = 0 : i64, scratch_operands = 1 : i64, tpu.core_type = #tpu.core_type<tc>, window_params = [{transform_indices = @transform_0, window_bounds = array<i64: 64, 128>}, {pipeline_mode = #tpu.pipeline_mode<synchronous>, transform_indices = @transform_1, window_bounds = array<i64: 16, 128>}, {pipeline_mode = #tpu.pipeline_mode<synchronous>, transform_indices = @transform_2, window_bounds = array<i64: 384, 128>}, {pipeline_mode = #tpu.pipeline_mode<synchronous>, transform_indices = @transform_3, window_bounds = array<i64: 8, 128>}, {pipeline_mode = #tpu.pipeline_mode<synchronous>, transform_indices = @transform_4, window_bounds = array<i64: 16, 128>}]} {
    %c0 = arith.constant 0 : index
    %c0_0 = arith.constant 0 : index
    %0 = vector.load %arg1[%c0, %c0_0] : memref<64x128xf32, #tpu.memory_space<vmem>>, vector<64x128xf32>
    %c0_1 = arith.constant 0 : index
    %c0_2 = arith.constant 0 : index
    %1 = vector.load %arg3[%c0_1, %c0_2] : memref<384x128xbf16, #tpu.memory_space<vmem>>, vector<128x128xbf16>
    %2 = arith.truncf %0 : vector<64x128xf32> to vector<64x128xbf16>
    %cst = arith.constant dense<0.000000e+00> : vector<64x128xf32>
    %3 = tpu.matmul %2, %1, %cst {dimension_numbers = #tpu.dot_dimension_numbers<[1], [0], [0], [1], [0, 0, 1, 1], [], []>} : vector<64x128xbf16>, vector<128x128xbf16>, vector<64x128xf32> -> vector<64x128xf32>
    %cst_3 = arith.constant 0.000000e+00 : f32
    %4 = vector.broadcast %cst_3 : f32 to vector<64x128xf32>
    %5 = arith.maximumf %3, %4 : vector<64x128xf32>
    %6 = vector.extract_strided_slice %0 {offsets = [0, 126], sizes = [64, 1], strides = [1, 1]} : vector<64x128xf32> to vector<64x1xf32>
    %7 = vector.broadcast %6 : vector<64x1xf32> to vector<64x128xf32>
    %8 = arith.mulf %5, %7 : vector<64x128xf32>
    %9 = vector.shape_cast %8 : vector<64x128xf32> to vector<8x8x128xf32>
    %cst_4 = arith.constant dense<0.000000e+00> : vector<8x128xf32>
    %10 = vector.multi_reduction <add>, %9, %cst_4 [1] : vector<8x8x128xf32> to vector<8x128xf32>
    %11 = arith.index_cast %arg0 : i32 to index
    %c0_5 = arith.constant 0 : index
    %c0_6 = arith.constant 0 : index
    %12 = vector.load %arg6[%11, %c0_5, %c0_6] : memref<2x8x128xf32, #tpu.memory_space<vmem>>, vector<1x8x128xf32>
    %13 = vector.shape_cast %12 : vector<1x8x128xf32> to vector<8x128xf32>
    %14 = vector.shape_cast %10 : vector<8x128xf32> to vector<1x8x128xf32>
    tpu.vector_store %arg6[%11, %c0_5, %c0_6], %14 {strides = array<i32>} : memref<2x8x128xf32, #tpu.memory_space<vmem>>, vector<1x8x128xf32>,
    %c1_i32 = arith.constant 1 : i32
    %15 = arith.cmpi eq, %arg0, %c1_i32 : i32
    %16 = arith.extui %15 : i1 to i32
    %c0_i32 = arith.constant 0 : i32
    %17 = arith.cmpi ne, %16, %c0_i32 : i32
    scf.if %17 {
      %c0_7 = arith.constant 0 : index
      %c0_8 = arith.constant 0 : index
      %c0_9 = arith.constant 0 : index
      %18 = vector.load %arg6[%c0_7, %c0_8, %c0_9] : memref<2x8x128xf32, #tpu.memory_space<vmem>>, vector<2x8x128xf32>
      %19 = vector.shape_cast %18 : vector<2x8x128xf32> to vector<16x128xf32>
      %cst_10 = arith.constant dense<0.000000e+00> : vector<128xf32>
      %20 = vector.multi_reduction <add>, %19, %cst_10 [0] : vector<16x128xf32> to vector<128xf32>
      %21 = vector.shape_cast %20 : vector<128xf32> to vector<1x128xf32>
      %cst_11 = arith.constant 0.0714285746 : f32
      %22 = vector.broadcast %cst_11 : f32 to vector<1x128xf32>
      %23 = arith.mulf %21, %22 : vector<1x128xf32>
      %24 = arith.mulf %19, %19 : vector<16x128xf32>
      %cst_12 = arith.constant dense<0.000000e+00> : vector<128xf32>
      %25 = vector.multi_reduction <add>, %24, %cst_12 [0] : vector<16x128xf32> to vector<128xf32>
      %26 = vector.shape_cast %25 : vector<128xf32> to vector<1x128xf32>
      %cst_13 = arith.constant 0.0714285746 : f32
      %27 = vector.broadcast %cst_13 : f32 to vector<1x128xf32>
      %28 = arith.mulf %26, %27 : vector<1x128xf32>
      %29 = arith.mulf %23, %23 : vector<1x128xf32>
      %30 = arith.subf %28, %29 : vector<1x128xf32>
      %c0_14 = arith.constant 0 : index
      %c0_15 = arith.constant 0 : index
      %31 = vector.load %arg4[%c0_14, %c0_15] : memref<8x128xf32, #tpu.memory_space<vmem>>, vector<1x128xf32>
      %c1 = arith.constant 1 : index
      %c0_16 = arith.constant 0 : index
      %32 = vector.load %arg4[%c1, %c0_16] : memref<8x128xf32, #tpu.memory_space<vmem>>, vector<1x128xf32>
      %cst_17 = arith.constant 9.99999974E-6 : f32
      %33 = vector.broadcast %cst_17 : f32 to vector<1x128xf32>
      %34 = arith.addf %30, %33 : vector<1x128xf32>
      %35 = math.rsqrt %34 : vector<1x128xf32>
      %36 = arith.mulf %31, %35 : vector<1x128xf32>
      %37 = vector.broadcast %36 : vector<1x128xf32> to vector<16x128xf32>
      %38 = arith.mulf %19, %37 : vector<16x128xf32>
      %39 = arith.mulf %23, %36 : vector<1x128xf32>
      %40 = arith.subf %32, %39 : vector<1x128xf32>
      %41 = vector.broadcast %40 : vector<1x128xf32> to vector<16x128xf32>
      %42 = arith.addf %38, %41 : vector<16x128xf32>
      %c0_18 = arith.constant 0 : index
      %c0_19 = arith.constant 0 : index
      %43 = vector.load %arg2[%c0_18, %c0_19] : memref<16x128xf32, #tpu.memory_space<vmem>>, vector<16x128xf32>
      %44 = vector.extract_strided_slice %43 {offsets = [0, 127], sizes = [16, 1], strides = [1, 1]} : vector<16x128xf32> to vector<16x1xf32>
      %45 = vector.broadcast %44 : vector<16x1xf32> to vector<16x128xf32>
      %46 = arith.mulf %42, %45 : vector<16x128xf32>
      %47 = arith.addf %46, %43 : vector<16x128xf32>
      %c128 = arith.constant 128 : index
      %c0_20 = arith.constant 0 : index
      %48 = vector.load %arg3[%c128, %c0_20] : memref<384x128xbf16, #tpu.memory_space<vmem>>, vector<128x128xbf16>
      %49 = arith.truncf %47 : vector<16x128xf32> to vector<16x128xbf16>
      %cst_21 = arith.constant dense<0.000000e+00> : vector<16x128xf32>
      %50 = tpu.matmul %49, %48, %cst_21 {dimension_numbers = #tpu.dot_dimension_numbers<[1], [0], [0], [1], [0, 0, 1, 1], [], []>} : vector<16x128xbf16>, vector<128x128xbf16>, vector<16x128xf32> -> vector<16x128xf32>
      %cst_22 = arith.constant 0.000000e+00 : f32
      %51 = vector.broadcast %cst_22 : f32 to vector<16x128xf32>
      %52 = arith.maximumf %50, %51 : vector<16x128xf32>
      %cst_23 = arith.constant dense<0.000000e+00> : vector<128xf32>
      %53 = vector.multi_reduction <add>, %52, %cst_23 [0] : vector<16x128xf32> to vector<128xf32>
      %54 = vector.shape_cast %53 : vector<128xf32> to vector<1x128xf32>
      %cst_24 = arith.constant 0.0714285746 : f32
      %55 = vector.broadcast %cst_24 : f32 to vector<1x128xf32>
      %56 = arith.mulf %54, %55 : vector<1x128xf32>
      %57 = arith.mulf %52, %52 : vector<16x128xf32>
      %cst_25 = arith.constant dense<0.000000e+00> : vector<128xf32>
      %58 = vector.multi_reduction <add>, %57, %cst_25 [0] : vector<16x128xf32> to vector<128xf32>
      %59 = vector.shape_cast %58 : vector<128xf32> to vector<1x128xf32>
      %cst_26 = arith.constant 0.0714285746 : f32
      %60 = vector.broadcast %cst_26 : f32 to vector<1x128xf32>
      %61 = arith.mulf %59, %60 : vector<1x128xf32>
      %62 = arith.mulf %56, %56 : vector<1x128xf32>
      %63 = arith.subf %61, %62 : vector<1x128xf32>
      %c2 = arith.constant 2 : index
      %c0_27 = arith.constant 0 : index
      %64 = vector.load %arg4[%c2, %c0_27] : memref<8x128xf32, #tpu.memory_space<vmem>>, vector<1x128xf32>
      %c3 = arith.constant 3 : index
      %c0_28 = arith.constant 0 : index
      %65 = vector.load %arg4[%c3, %c0_28] : memref<8x128xf32, #tpu.memory_space<vmem>>, vector<1x128xf32>
      %cst_29 = arith.constant 9.99999974E-6 : f32
      %66 = vector.broadcast %cst_29 : f32 to vector<1x128xf32>
      %67 = arith.addf %63, %66 : vector<1x128xf32>
      %68 = math.rsqrt %67 : vector<1x128xf32>
      %69 = arith.mulf %64, %68 : vector<1x128xf32>
      %70 = vector.broadcast %69 : vector<1x128xf32> to vector<16x128xf32>
      %71 = arith.mulf %52, %70 : vector<16x128xf32>
      %72 = arith.mulf %56, %69 : vector<1x128xf32>
      %73 = arith.subf %65, %72 : vector<1x128xf32>
      %74 = vector.broadcast %73 : vector<1x128xf32> to vector<16x128xf32>
      %75 = arith.addf %71, %74 : vector<16x128xf32>
      %c256 = arith.constant 256 : index
      %c0_30 = arith.constant 0 : index
      %76 = vector.load %arg3[%c256, %c0_30] : memref<384x128xbf16, #tpu.memory_space<vmem>>, vector<128x128xbf16>
      %77 = arith.truncf %75 : vector<16x128xf32> to vector<16x128xbf16>
      %cst_31 = arith.constant dense<0.000000e+00> : vector<16x128xf32>
      %78 = tpu.matmul %77, %76, %cst_31 {dimension_numbers = #tpu.dot_dimension_numbers<[1], [0], [0], [1], [0, 0, 1, 1], [], []>} : vector<16x128xbf16>, vector<128x128xbf16>, vector<16x128xf32> -> vector<16x128xf32>
      %c0_32 = arith.constant 0 : index
      %c0_33 = arith.constant 0 : index
      %79 = vector.load %arg5[%c0_32, %c0_33] : memref<16x128xf32, #tpu.memory_space<vmem>>, vector<16x128xf32>
      tpu.vector_store %arg5[%c0_32, %c0_33], %78 {strides = array<i32>} : memref<16x128xf32, #tpu.memory_space<vmem>>, vector<16x128xf32>,
    } else {
    }
    return
  }
  func.func @transform_0(%arg0: i32) -> (i32, i32) {
    %c0_i32 = arith.constant 0 : i32
    %c0_i32_0 = arith.constant 0 : i32
    return %arg0, %c0_i32 : i32, i32
  }
  func.func @transform_1(%arg0: i32) -> (i32, i32) {
    %c0_i32 = arith.constant 0 : i32
    %c0_i32_0 = arith.constant 0 : i32
    %c0_i32_1 = arith.constant 0 : i32
    return %c0_i32, %c0_i32_0 : i32, i32
  }
  func.func @transform_2(%arg0: i32) -> (i32, i32) {
    %c0_i32 = arith.constant 0 : i32
    %c0_i32_0 = arith.constant 0 : i32
    %c0_i32_1 = arith.constant 0 : i32
    return %c0_i32, %c0_i32_0 : i32, i32
  }
  func.func @transform_3(%arg0: i32) -> (i32, i32) {
    %c0_i32 = arith.constant 0 : i32
    %c0_i32_0 = arith.constant 0 : i32
    %c0_i32_1 = arith.constant 0 : i32
    return %c0_i32, %c0_i32_0 : i32, i32
  }
  func.func @transform_4(%arg0: i32) -> (i32, i32) {
    %c0_i32 = arith.constant 0 : i32
    %c0_i32_0 = arith.constant 0 : i32
    %c0_i32_1 = arith.constant 0 : i32
    return %c0_i32, %c0_i32_0 : i32, i32
  }
}

</mosaic_0001>

<bundles_post_ra>
// kernel: tpu_custom_call.1
= control target key start
LH: loop header
LB: loop body
LE: loop exit
PB: predicated region body
PF: predicated region fallthrough
CT: control target
= control target key end

     0   :  { %9 = vsyncpa [#allocation4], 0  ;;  %s1613_s0 = inlined_call_operand.hbm [shape: f32[128,128], index: 0, kind: input, shape index: {}]   ;;  %s1614_s1 = inlined_call_operand.hbm [shape: f32[16,128], index: 1, kind: input, shape index: {}]   ;;  %s1615_s2 = inlined_call_operand.hbm [shape: bf16[384,128], index: 2, kind: input, shape index: {}]   ;;  %s1616_s3 = inlined_call_operand.vmem [shape: f32[8,128], index: 3, kind: input, shape index: {}]   ;;  %s1617_s4 = inlined_call_operand.hbm [shape: f32[16,128], index: 4, kind: output, shape index: {}]  }
   0x1   :  { %11 = vsyncpa [#allocation4 + $0x1], 0 }
   0x2   :  { %12 = vsyncpa [#allocation7], 0 }
   0x3   :  { %13 = vsyncpa [#allocation5], 0  ;;  %s1358_s15 = smov 0   ;;  %s1360_s16 = smov 0  }
   0x4   :  { %s1362_s17 = smov 0   ;;  %s1364_s18 = smov 0  }
   0x5 LB: > { %s1377_s19 = sadd.s32 4294967295, %s1317_s18   ;;  %p39_p0 = scmp.ne.s32.totalorder %s1309_s16, %s1305_s15  ;;  %s1317_s18 = sphi %s1364_s18, %s1632_s18   ;;  %s1313_s17 = sphi %s1362_s17, %s1631_s17   ;;  %s1309_s16 = sphi %s1360_s16, %s1630_s16   ;;  %s1305_s15 = sphi %s1358_s15, %s1629_s15  }
   0x6   : > { %p1618_p1 = scmp.eq.s32.totalorder %s1377_s19, 0  ;;  %p903_p2 = scmp.ge.s32.totalorder %s1317_s18, 1 }
   0x7   : > { %p134_p3 = scmp.lt.s32.totalorder %s1317_s18, 3  ;;  %s1319_s22 = smov [#allocation6]  }
   0x8   : > { %p1385_p4 = por %p1618_p1, %p39_p0  ;;  %s146_s23 = sshll.u32 %s1319_s22, 4  ;;  %s147_s23 = int_to_ptr.vmem [resolvable:$true] %s146_s23 }
   0x9   : > { %p1389_p5 = pnand %p903_p2, %p134_p3  ;;  %s1320_s25 = smov [#allocation8]  }
   0xa   : > { %s1621_s20 = scalar_select %p1385_p4, 1, 0 }
   0xb   : > { %s1622_s21 = scalar_select %p1389_p5, 1, 0 }
   0xc   : > { %p1069_p6 = pneg %p1389_p5  ;;  %s159_s26 = sshll.u32 %s1320_s25, 4  ;;  %s1401_s26 = int_to_ptr.vmem [resolvable:$true] %s159_s26 }
   0xd   : > { %s1163_s29 = scalar_lea.hbm %s1614_s1, 256 }
   0xe   : > { %p1397_p7 = pnand %p1069_p6, %p1618_p1  ;;  %p1164_p8 = scmp.ne.s32.totalorder %s1614_s1, %s1163_s29 }
   0xf   : > { %p1170_p12 = scmp.lt.u32.totalorder %s1163_s29, %s1614_s1 }
  0x10   : > { %p1165_p9 = pneg %p1397_p7 }
  0x12   : > { %p1166_p10 = pnand %p1165_p9, %p1164_p8 }
  0x14   : > { %p1167_p11 = pneg %p1166_p10 }
  0x16   : > { %p1172_p13 = pnand %p1170_p12, %p1167_p11 }
  0x18   : > { %1175 = shalt.err (!%p1172_p13)
}
  0x19   : > { %s1176_s8 = scalar_lea.vmem %s147_s23, 256  ;;  %p1184_p6 = scmp.lt.s32.totalorder %s147_s23, %s147_s23 }
  0x1a   : > { %p1177_p0 = scmp.ne.s32.totalorder %s147_s23, %s1176_s8  ;;  %p1185_p1 = scmp.lt.s32.totalorder %s1176_s8, %s1176_s8 }
  0x1c   : > { %p1179_p2 = pnand %p1177_p0, %p1165_p9  ;;  %p1186_p4 = por %p1185_p1, %p1184_p6 }
  0x1e   : > { %p1180_p3 = pneg %p1179_p2 }
  0x20   : > { %p1187_p5 = pnand %p1186_p4, %p1180_p3 }
  0x22   : > { %1190 = shalt.err (!%p1187_p5)
}
  0x23   : > { %s1321_s9 = smov 128   ;;  %s1322_s10 = smov 8  }
  0x24   : > { %1072 = dma.hbm_to_vmem [thread:$0]  (!%p1397_p7), %s1614_s1, 256, %s147_s23, [#allocation7], %s1321_s9, %s1321_s9, %s1322_s10  }
  0x25   : > { %s1191_s15 = scalar_lea.hbm %s1615_s2, 3072 }
  0x26   : > { %p1192_p1 = scmp.ne.s32.totalorder %s1615_s2, %s1191_s15  ;;  %p1198_p8 = scmp.lt.u32.totalorder %s1191_s15, %s1615_s2 }
  0x28   : > { %p1194_p4 = pnand %p1192_p1, %p1165_p9 }
  0x2a   : > { %p1195_p5 = pneg %p1194_p4 }
  0x2c   : > { %p1200_p10 = pnand %p1198_p8, %p1195_p5 }
  0x2e   : > { %1203 = shalt.err (!%p1200_p10)
}
  0x2f   : > { %s1204_s23 = scalar_lea.vmem %s1401_s26, 3072  ;;  %p1212_p0 = scmp.lt.s32.totalorder %s1401_s26, %s1401_s26 }
  0x30   : > { %p1205_p11 = scmp.ne.s32.totalorder %s1401_s26, %s1204_s23  ;;  %p1213_p2 = scmp.lt.s32.totalorder %s1204_s23, %s1204_s23 }
  0x32   : > { %p1207_p12 = pnand %p1205_p11, %p1165_p9  ;;  %p1214_p3 = por %p1213_p2, %p1212_p0 }
  0x34   : > { %p1208_p13 = pneg %p1207_p12 }
  0x36   : > { %p1215_p6 = pnand %p1214_p3, %p1208_p13 }
  0x38   : > { %1218 = shalt.err (!%p1215_p6)
}
  0x39   : > { %s1323_s29 = smov 64   ;;  %s1324_s30 = smov 4  }
  0x3a   : > { %1075 = dma.hbm_to_vmem [thread:$0]  (!%p1397_p7), %s1615_s2, 3072, %s1401_s26, [#allocation7], %s1323_s29, %s1323_s29, %s1324_s30  }
  0x3b   : > { %s1454_s7 = sadd.s32 1, %s1317_s18   ;;  %s26_s11 = sadd.s32 1, %s1313_s17 }
  0x3c   : > { %s23_s8 = ssub.s32 %s1317_s18, %s1454_s7  ;;  %p33_p1 = scmp.ne.s32.totalorder %s1313_s17, %s1309_s16 }
  0x3d   : > { %p24_p9 = scmp.eq.s32.totalorder %s23_s8, 0  ;;  %p34_p4 = scmp.eq.s32.totalorder %s1317_s18, 0 }
  0x3e   : > { %p1082_p8 = scmp.lt.s32.totalorder %s1317_s18, 2  ;;  %s176_s13 = sand.u32 1, %s1313_s17  }
  0x3f   : > { %s1463_s12 = scalar_select %p24_p9, %s1313_s17, %s26_s11  }
  0x40   : > { %p35_p5 = por %p34_p4, %p33_p1  ;;  %s944_s14 = sshll.u32 %s1317_s18, 10 }
  0x41   : > { %s907_s15 = sshll.u32 %s176_s13, 6  ;;  %s1471_s25 = scalar_lea.hbm %s1613_s0, %s944_s14 }
  0x42   : > { %s180_s26 = scalar_lea.vmem [#allocation3], %s907_s15  ;;  %p1473_p7 = pnand %p1082_p8, %p35_p5 }
  0x43   : > { %s187_s27 = sshll.u32 %s180_s26, 4  ;;  %s1479_s18 = scalar_lea.sflag [#allocation4], %s176_s13  ;;  %s1477_s27 = int_to_ptr.vmem [resolvable:$true] %s187_s27 }
  0x44   : > { %s1219_s23 = scalar_lea.hbm %s1471_s25, 1024  ;;  %p1221_p11 = pneg %p1473_p7 }
  0x45   : > { %p1220_p10 = scmp.ne.s32.totalorder %s1471_s25, %s1219_s23  ;;  %s1224_s5 = scalar_lea.hbm %s1613_s0, 2048 }
  0x46   : > { %p1225_p0 = scmp.lt.u32.totalorder %s1471_s25, %s1613_s0  ;;  %p1226_p2 = scmp.lt.u32.totalorder %s1224_s5, %s1219_s23 }
  0x47   : > { %p1222_p12 = pnand %p1221_p11, %p1220_p10  ;;  %p1228_p6 = scmp.lt.u32.totalorder %s1219_s23, %s1471_s25 }
  0x48   : > { %p1227_p3 = por %p1226_p2, %p1225_p0 }
  0x49   : > { %p1223_p13 = pneg %p1222_p12 }
  0x4a   : > { %p1229_p9 = por %p1228_p6, %p1227_p3 }
  0x4c   : > { %p1230_p1 = pnand %p1229_p9, %p1223_p13 }
  0x4e   : > { %1233 = shalt.err (!%p1230_p1)
}
  0x4f   : > { %s1234_s11 = scalar_lea.vmem %s1477_s27, 1024  ;;  %s1325_s13 = smov [#allocation3]  }
  0x50   : > { %p1235_p4 = scmp.ne.s32.totalorder %s1477_s27, %s1234_s11  ;;  %s1239_s14 = sshll.u32 %s1325_s13, 4  ;;  %s1240_s14 = int_to_ptr.vmem [resolvable:$false] %s1239_s14 }
  0x51   : > { %s1241_s15 = scalar_lea.vmem %s1240_s14, 2048  ;;  %p1242_p10 = scmp.lt.s32.totalorder %s1477_s27, %s1240_s14 }
  0x52   : > { %p1237_p5 = pnand %p1235_p4, %p1221_p11  ;;  %p1243_p12 = scmp.lt.s32.totalorder %s1241_s15, %s1234_s11 }
  0x54   : > { %p1238_p8 = pneg %p1237_p5  ;;  %p1244_p0 = por %p1243_p12, %p1242_p10 }
  0x56   : > { %p1245_p2 = pnand %p1244_p0, %p1238_p8 }
  0x58   : > { %1248 = shalt.err (!%p1245_p2)
}
  0x59   : > { %1079 = dma.hbm_to_vmem [thread:$0]  (!%p1473_p7), %s1471_s25, 1024, %s1477_s27, %s1479_s18, %s1321_s9, %s1321_s9, %s1322_s10  }
  0x5a   : > { %p1625_p11 = scmp.ne.s32.totalorder %s1622_s21, 0 }
  0x5b   : > { %s201_s24 = sand.u32 (!%p1625_p11), 1, %s1309_s16   ;;  %p1626_p13 = scmp.ne.s32.totalorder (!%p1625_p11), %s1621_s20, 0 }
  0x5c   : > { %199 = sbr.rel (%p1625_p11) target bundleno = 1007 (0x3ef), region = 36  ;;  %s911_s22 = sshll.u32 (!%p1625_p11), %s201_s24, 6 }
  0x5d   : > { %s202_s26 = scalar_lea.sflag (!%p1625_p11), [#allocation4], %s201_s24  ;;  %s1513_s23 = scalar_lea.vmem (!%p1625_p11), [#allocation3], %s911_s22 }
  0x63   : > { %1292 = dma.done.wait (%p1626_p13), %s202_s26, 1024  }
  0x64   : > { %1294 = vsyncadd (%p1626_p13), %s202_s26, 4294966272  ;;  %p1627_p3 = scmp.eq.s32.totalorder %s1377_s19, 0 }
  0x66   : > { %1296 = dma.done.wait (%p1627_p3), [#allocation7], 3328   ;;  %p1628_p7 = pmov %p1627_p3 }
  0x67   : > { %v1326_v0 = vmov 126   ;;  %v1134_v1 = vld [vmem:[#allocation8] sm:$0xff]   ;;  %v1135_v2 = vld [vmem:[#allocation8 + $0x8] sm:$0xff]   ;;  %v1136_v3 = vld [vmem:[#allocation8 + $0x10] sm:$0xff]   ;;  %vm488_vm0 = vcmask 1041409   ;;  %vm490_vm1 = vcmask 1042434  }
  0x68   : > { %1298 = vsyncadd (%p1628_p7), [#allocation7], 4294963968  ;;  %1132 = vset.pattern.permute.xlu0 %v1326_v0  ;;  %1133 = vset.pattern.permute.xlu1 %v1326_v0  ;;  %v1137_v4 = vld [vmem:[#allocation8 + $0x18] sm:$0xff]   ;;  %v235_v5 = vld [vmem:[%s1513_s23] sm:$0xff]  ;;  %vm492_vm2 = vcmask 1043459   ;;  %vm494_vm3 = vcmask 1044484  }
  0x69   : > { %975 = vmatprep.subr.bf16.mxu0 %v1134_v1  ;;  %1039 = vmatprep.subr.bf16.mxu1 %v1134_v1  ;;  %v236_v6 = vld [vmem:[%s1513_s23 + $0x8] sm:$0xff]  ;;  %v239_v7 = vld [vmem:[%s1513_s23 + $0x20] sm:$0xff]  ;;  %v237_v10 = vld [vmem:[%s1513_s23 + $0x10] sm:$0xff]  ;;  %vm496_vm4 = vcmask 1045509   ;;  %s922_s20 = sshll.u32 %s1377_s19, 3  ;;  %vm498_vm5 = vcmask 1046534  }
  0x6a   : > { %976 = vmatpush3.bf16.msra.mxu0 %v1134_v1  ;;  %1047 = vmatpush3.bf16.msra.mxu1 %v1134_v1  ;;  %v259_v8 = vpack.c.bf16 %v236_v6, %v235_v5  ;;  %v240_v9 = vld [vmem:[%s1513_s23 + $0x28] sm:$0xff]  ;;  %v1138_v12 = vld [vmem:[#allocation8 + $0x20] sm:$0xff]   ;;  %v238_v13 = vld [vmem:[%s1513_s23 + $0x18] sm:$0xff]  ;;  %vm500_vm6 = vcmask 1047559   ;;  %s504_s21 = scalar_lea.vmem [#allocation2], %s922_s20  ;;  %p923_p6 = scmp.ne.s32.totalorder %s1377_s19, 1 }
  0x6b   : > { %977 = vmatprep.subr.bf16.mxu0 %v1135_v2  ;;  %1040 = vmatprep.subr.bf16.mxu1 %v1135_v2  ;;  %v261_v11 = vpack.c.bf16 %v240_v9, %v239_v7  ;;  %v1139_v14 = vld [vmem:[#allocation8 + $0x28] sm:$0xff]   ;;  %v1140_v15 = vld [vmem:[#allocation8 + $0x30] sm:$0xff]   ;;  %v241_v16 = vld [vmem:[%s1513_s23 + $0x30] sm:$0xff]  ;;  %v260_v19 = vpack.c.bf16 %v238_v13, %v237_v10  ;;  %vm1329_vm7 = vmmov (!%p923_p6), 0  }
  0x6c   : > { %386 = vperm.xlu0 %1132, %v235_v5   ;;  %396 = vperm.xlu1 %1133, %v237_v10   ;;  %v242_v17 = vld [vmem:[%s1513_s23 + $0x38] sm:$0xff]  ;;  %v1141_v18 = vld [vmem:[#allocation8 + $0x38] sm:$0xff]  }
  0x6d   : > { %991 = vmatprep.mubr.bf16.mxu0 %v259_v8  ;;  %995 = vmatprep.mubr.bf16.mxu1 %v261_v11  ;;  %v262_v20 = vpack.c.bf16 %v242_v17, %v241_v16 }
  0x6e   : > { %978 = vmatpush3.bf16.msra.mxu0 %v1135_v2  ;;  %1048 = vmatpush3.bf16.msra.mxu1 %v1135_v2 }
  0x6f   : > { %979 = vmatprep.subr.bf16.mxu0 %v1136_v3  ;;  %1041 = vmatprep.subr.bf16.mxu1 %v1136_v3 }
  0x70   : > { %391 = vperm.xlu0 %1132, %v236_v6   ;;  %401 = vperm.xlu1 %1133, %v238_v13  }
  0x72   : > { %980 = vmatpush3.bf16.msra.mxu0 %v1136_v3  ;;  %1049 = vmatpush3.bf16.msra.mxu1 %v1136_v3 }
  0x73   : > { %981 = vmatprep.subr.bf16.mxu0 %v1137_v4  ;;  %1042 = vmatprep.subr.bf16.mxu1 %v1137_v4 }
  0x74   : > { %406 = vperm.xlu0 %1132, %v239_v7   ;;  %411 = vperm.xlu1 %1133, %v240_v9  }
  0x76   : > { %982 = vmatpush3.bf16.msra.mxu0 %v1137_v4  ;;  %1050 = vmatpush3.bf16.msra.mxu1 %v1137_v4 }
  0x77   : > { %983 = vmatprep.subr.bf16.mxu0 %v1138_v12  ;;  %1043 = vmatprep.subr.bf16.mxu1 %v1138_v12 }
  0x78   : > { %416 = vperm.xlu0 %1132, %v241_v16   ;;  %421 = vperm.xlu1 %1133, %v242_v17  }
  0x7a   : > { %984 = vmatpush3.bf16.msra.mxu0 %v1138_v12  ;;  %1051 = vmatpush3.bf16.msra.mxu1 %v1138_v12 }
  0x7b   : > { %985 = vmatprep.subr.bf16.mxu0 %v1139_v14  ;;  %1044 = vmatprep.subr.bf16.mxu1 %v1139_v14 }
  0x7e   : > { %986 = vmatpush3.bf16.msra.mxu0 %v1139_v14  ;;  %1052 = vmatpush3.bf16.msra.mxu1 %v1139_v14 }
  0x7f   : > { %987 = vmatprep.subr.bf16.mxu0 %v1140_v15  ;;  %1045 = vmatprep.subr.bf16.mxu1 %v1140_v15 }
  0x82   : > { %988 = vmatpush3.bf16.msra.mxu0 %v1140_v15  ;;  %1053 = vmatpush3.bf16.msra.mxu1 %v1140_v15 }
  0x83   : > { %989 = vmatprep.subr.bf16.mxu0 %v1141_v18  ;;  %1046 = vmatprep.subr.bf16.mxu1 %v1141_v18 }
  0x86   : > { %990 = vmatpush3.bf16.msra.mxu0 %v1141_v18  ;;  %1054 = vmatpush3.bf16.msra.mxu1 %v1141_v18 }
  0x89   : > { %992 = vmatmul.mubr.bf16.vlgmr.msra.gmra.mrb[0].mxu0 %v260_v19  ;;  %996 = vmatmul.mubr.bf16.vlgmr.msra.gmra.mrb[0].mxu1 %v262_v20 }
  0xeb   : > { %v387_v21 = vpop.permute.xlu0 %386  ;;  %v397_v22 = vpop.permute.xlu1 %396 }
  0xef   : > { %v392_v23 = vpop.permute.xlu0 %391  ;;  %v402_v24 = vpop.permute.xlu1 %401 }
  0xf3   : > { %v407_v25 = vpop.permute.xlu0 %406  ;;  %v412_v26 = vpop.permute.xlu1 %411 }
  0xf7   : > { %v417_v27 = vpop.permute.xlu0 %416  ;;  %v422_v44 = vpop.permute.xlu1 %421 }
 0x15c   : > { %v993_v28 = vpop.f32.mrb[0].mxu0  ;;  %v997_v29 = vpop.f32.mrb[0].mxu1 }
 0x15d   : > { %v378_v30 = vmax.f32 %v993_v28, 0.0  ;;  %v382_v31 = vmax.f32 %v997_v29, 0.0  ;;  %v345_v32 = vpop.f32.mrb[1].mxu0  ;;  %v361_v33 = vpop.f32.mrb[1].mxu1 }
 0x15e   : > { %v376_v34 = vmax.f32 %v345_v32, 0.0  ;;  %v380_v35 = vmax.f32 %v361_v33, 0.0  ;;  %v994_v36 = vpop.f32.mrb[2].mxu0  ;;  %v998_v37 = vpop.f32.mrb[2].mxu1 }
 0x15f   : > { %v426_v38 = vmul.f32 %v397_v22, %v378_v30  ;;  %v430_v39 = vmul.f32 %v417_v27, %v382_v31  ;;  %v379_v40 = vmax.f32 %v994_v36, 0.0  ;;  %v383_v41 = vmax.f32 %v998_v37, 0.0  ;;  %v348_v42 = vpop.f32.mrb[3].mxu0  ;;  %v364_v43 = vpop.f32.mrb[3].mxu1 }
 0x160   : > { %v424_v45 = vmul.f32 %v387_v21, %v376_v34  ;;  %v428_v46 = vmul.f32 %v407_v25, %v380_v35  ;;  %v377_v47 = vmax.f32 %v348_v42, 0.0  ;;  %v381_v48 = vmax.f32 %v364_v43, 0.0 }
 0x161   : > { %v444_v49 = vrot.slane %v426_v38, 4  ;;  %v468_v50 = vrot.slane %v430_v39, 4  ;;  %v427_v51 = vmul.f32 %v402_v24, %v379_v40  ;;  %v431_v52 = vmul.f32 %v422_v44, %v383_v41  ;;  %v1533_v44 = vld [vmem:[#allocation6] sm:$0xff] (!%p923_p6) }
 0x162   : > { %v432_v53 = vrot.slane %v424_v45, 4  ;;  %v456_v54 = vrot.slane %v428_v46, 4  ;;  %v425_v55 = vmul.f32 %v392_v23, %v377_v47  ;;  %v429_v56 = vmul.f32 %v412_v26, %v381_v48  ;;  %v1143_v47 = vld [vmem:[#allocation8 + $0x40] sm:$0xff] (!%p923_p6)   ;;  %v1537_v48 = vld [vmem:[#allocation6 + $0x8] sm:$0xff] (!%p923_p6) }
 0x163   : > { %v445_v57 = vadd.f32 %v444_v49, %v426_v38  ;;  %v469_v58 = vadd.f32 %v468_v50, %v430_v39  ;;  %v450_v59 = vrot.slane %v427_v51, 4  ;;  %v474_v60 = vrot.slane %v431_v52, 4  ;;  %v1144_v49 = vld [vmem:[#allocation8 + $0x48] sm:$0xff] (!%p923_p6)   ;;  %v1145_v50 = vld [vmem:[#allocation8 + $0x50] sm:$0xff] (!%p923_p6)  }
 0x164   : > { %v433_v61 = vadd.f32 %v432_v53, %v424_v45  ;;  %v457_v62 = vadd.f32 %v456_v54, %v428_v46  ;;  %v438_v63 = vrot.slane %v425_v55, 4  ;;  %v462_v0 = vrot.slane %v429_v56, 4  ;;  %v1148_v53 = vld [vmem:[#allocation8 + $0x68] sm:$0xff] (!%p923_p6)   ;;  %v1149_v54 = vld [vmem:[#allocation8 + $0x70] sm:$0xff] (!%p923_p6)  }
 0x165   : > { %v446_v1 = vrot.slane %v445_v57, 2  ;;  %v451_v2 = vadd.f32 %v450_v59, %v427_v51  ;;  %v475_v3 = vadd.f32 %v474_v60, %v431_v52  ;;  %v470_v9 = vrot.slane %v469_v58, 2  ;;  %v1146_v51 = vld [vmem:[#allocation8 + $0x58] sm:$0xff] (!%p923_p6)   ;;  %v1147_v52 = vld [vmem:[#allocation8 + $0x60] sm:$0xff] (!%p923_p6)  }
 0x166   : > { %v434_v4 = vrot.slane %v433_v61, 2  ;;  %v458_v5 = vrot.slane %v457_v62, 2  ;;  %v439_v6 = vadd.f32 %v438_v63, %v425_v55  ;;  %v463_v7 = vadd.f32 %v462_v0, %v429_v56  ;;  %v1150_v55 = vld [vmem:[#allocation8 + $0x78] sm:$0xff] (!%p923_p6)  }
 0x167   : > { %v447_v8 = vadd.f32 %v446_v1, %v445_v57  ;;  %v452_v10 = vrot.slane %v451_v2, 2  ;;  %v476_v12 = vrot.slane %v475_v3, 2  ;;  %v471_v21 = vadd.f32 %v470_v9, %v469_v58 }
 0x168   : > { %v435_v11 = vadd.f32 %v434_v4, %v433_v61  ;;  %v440_v13 = vrot.slane %v439_v6, 2  ;;  %v464_v14 = vrot.slane %v463_v7, 2  ;;  %v459_v15 = vadd.f32 %v458_v5, %v457_v62 }
 0x169   : > { %v453_v16 = vadd.f32 %v452_v10, %v451_v2  ;;  %v448_v20 = vrot.slane %v447_v8, 1  ;;  %v477_v23 = vadd.f32 %v476_v12, %v475_v3  ;;  %v472_v30 = vrot.slane %v471_v21, 1 }
 0x16a   : > { %v436_v17 = vrot.slane %v435_v11, 1  ;;  %v441_v18 = vadd.f32 %v440_v13, %v439_v6  ;;  %v465_v19 = vadd.f32 %v464_v14, %v463_v7  ;;  %v460_v25 = vrot.slane %v459_v15, 1 }
 0x16b   : > { %v454_v22 = vrot.slane %v453_v16, 1  ;;  %v449_v29 = vadd.f32 %v448_v20, %v447_v8  ;;  %v478_v32 = vrot.slane %v477_v23, 1  ;;  %v473_v38 = vadd.f32 %v472_v30, %v471_v21 }
 0x16c   : > { %v442_v24 = vrot.slane %v441_v18, 1  ;;  %v437_v26 = vadd.f32 %v436_v17, %v435_v11  ;;  %v466_v28 = vrot.slane %v465_v19, 1  ;;  %v461_v34 = vadd.f32 %v460_v25, %v459_v15  ;;  %v532_v17 = vld [vmem:[%s1616_s3] sm:$0x1] (!%p923_p6) }
 0x16d   : > { %v455_v31 = vadd.f32 %v454_v22, %v453_v16  ;;  %v479_v40 = vadd.f32 %v478_v32, %v477_v23  ;;  %v1327_v45 = vmov (!%p923_p6), 127   ;;  %v1328_v46 = vmov (!%p923_p6), 0.0   ;;  %v533_v22 = vld [vmem:[%s1616_s3 + $0x1] sm:$0x1] (!%p923_p6) }
 0x16e   : > { %v443_v27 = vadd.f32 %v442_v24, %v441_v18  ;;  %v467_v36 = vadd.f32 %v466_v28, %v465_v19  ;;  %1142 = vset.pattern.permute.xlu0 (!%p923_p6), %v1327_v45  ;;  %999 = vmatprep.subr.bf16.mxu0 (!%p923_p6), %v1328_v46  ;;  %v537_v15 = vlaneseq (!%p923_p6) }
 0x16f   : > { %555 = vperm.xlu0 (!%p923_p6), %1142, %v1533_v44   ;;  %1019 = vmatprep.subr.bf16.mxu1 (!%p923_p6), %v1328_v46 }
 0x170   : > { %v489_v33 = vsel %vm488_vm0, %v443_v27, %v437_v26  ;;  %1000 = vmatpush3.bf16.msra.mxu0 (!%p923_p6), %v1143_v47  ;;  %1015 = vmatprep.mubr.msk.bf16.mxu0 (!%p923_p6), %vm1329_vm7, %v1328_v46  ;;  %v538_v19 = vshrl.u32 (!%p923_p6), %v537_v15, 7 }
 0x171   : > { %v491_v35 = vsel %vm490_vm1, %v449_v29, %v489_v33  ;;  %509 = sbr.rel (%p923_p6) target bundleno = 981 (0x3d5), region = 52  ;;  %1001 = vmatprep.subr.bf16.mxu0 (!%p923_p6), %v1328_v46  ;;  %1035 = vmatprep.mubr.msk.bf16.mxu1 (!%p923_p6), %vm1329_vm7, %v1328_v46 }
 0x172   : > { %v493_v37 = vsel %vm492_vm2, %v455_v31, %v491_v35  ;;  %v1553_v20 = vsub.s32 (!%p923_p6), 0, %v538_v19 }
 0x173   : > { %v495_v39 = vsel %vm494_vm3, %v461_v34, %v493_v37  ;;  %560 = vperm.xlu0 (!%p923_p6), %1142, %v1537_v48   ;;  %v1151_v37 = vld [vmem:[#allocation8 + $0x80] sm:$0xff] (!%p923_p6)  }
 0x174   : > { %v497_v41 = vsel %vm496_vm4, %v467_v36, %v495_v39  ;;  %1002 = vmatpush3.bf16.msra.mxu0 (!%p923_p6), %v1144_v49  ;;  %1020 = vmatpush3.bf16.msra.mxu1 (!%p923_p6), %v1151_v37  ;;  %v1153_v39 = vld [vmem:[#allocation8 + $0x90] sm:$0xff] (!%p923_p6)  }
 0x175   : > { %v499_v42 = vsel %vm498_vm5, %v473_v38, %v497_v41  ;;  %1003 = vmatprep.subr.bf16.mxu0 (!%p923_p6), %v1328_v46  ;;  %1021 = vmatprep.subr.bf16.mxu1 (!%p923_p6), %v1328_v46  ;;  %v1152_v38 = vld [vmem:[#allocation8 + $0x88] sm:$0xff] (!%p923_p6)   ;;  %v1155_v41 = vld [vmem:[#allocation8 + $0xa0] sm:$0xff] (!%p923_p6)  }
 0x176   : > { %v501_v43 = vsel %vm500_vm6, %v479_v40, %v499_v42  ;;  %v1154_v40 = vld [vmem:[#allocation8 + $0x98] sm:$0xff] (!%p923_p6)   ;;  %v1156_v42 = vld [vmem:[#allocation8 + $0xa8] sm:$0xff] (!%p923_p6)  }
 0x177   : > { %505 = vst [vmem:[%s504_s21] sm:$0xff] %v501_v43  ;;  %v1157_v43 = vld [vmem:[#allocation8 + $0xb0] sm:$0xff] (!%p923_p6)  }
 0x178   : > { %1004 = vmatpush3.bf16.msra.mxu0 %v1145_v50  ;;  %1022 = vmatpush3.bf16.msra.mxu1 %v1152_v38 }
 0x179   : > { %1005 = vmatprep.subr.bf16.mxu0 %v1328_v46  ;;  %1023 = vmatprep.subr.bf16.mxu1 %v1328_v46 }
 0x17c   : > { %1006 = vmatpush3.bf16.msra.mxu0 %v1146_v51  ;;  %1024 = vmatpush3.bf16.msra.mxu1 %v1153_v39 }
 0x17d   : > { %1007 = vmatprep.subr.bf16.mxu0 %v1328_v46  ;;  %1025 = vmatprep.subr.bf16.mxu1 %v1328_v46 }
 0x17e   : > { %v510_v56 = vld [vmem:[#allocation2] sm:$0xff]  ;;  %v511_v57 = vld [vmem:[#allocation2 + $0x8] sm:$0xff] }
 0x17f   : > { %v512_v58 = vadd.f32 %v511_v57, %v510_v56  ;;  %v520_v59 = vmul.f32 %v510_v56, %v510_v56  ;;  %v521_v60 = vmul.f32 %v511_v57, %v511_v57 }
 0x180   : > { %1008 = vmatpush3.bf16.msra.mxu0 %v1147_v52  ;;  %1026 = vmatpush3.bf16.msra.mxu1 %v1154_v40 }
 0x181   : > { %1009 = vmatprep.subr.bf16.mxu0 %v1328_v46  ;;  %v513_v61 = vrot.slane %v512_v58, 4  ;;  %v522_v62 = vadd.f32 %v521_v60, %v520_v59  ;;  %1027 = vmatprep.subr.bf16.mxu1 %v1328_v46 }
 0x183   : > { %v514_v63 = vadd.f32 %v513_v61, %v512_v58  ;;  %v523_v0 = vrot.slane %v522_v62, 4 }
 0x184   : > { %1010 = vmatpush3.bf16.msra.mxu0 %v1148_v53  ;;  %1028 = vmatpush3.bf16.msra.mxu1 %v1155_v41 }
 0x185   : > { %1011 = vmatprep.subr.bf16.mxu0 %v1328_v46  ;;  %v515_v1 = vrot.slane %v514_v63, 2  ;;  %v524_v2 = vadd.f32 %v523_v0, %v522_v62  ;;  %1029 = vmatprep.subr.bf16.mxu1 %v1328_v46 }
 0x187   : > { %v516_v3 = vadd.f32 %v515_v1, %v514_v63  ;;  %v525_v4 = vrot.slane %v524_v2, 2 }
 0x188   : > { %1012 = vmatpush3.bf16.msra.mxu0 %v1149_v54  ;;  %1030 = vmatpush3.bf16.msra.mxu1 %v1156_v42 }
 0x189   : > { %1013 = vmatprep.subr.bf16.mxu0 %v1328_v46  ;;  %v517_v5 = vrot.slane %v516_v3, 1  ;;  %v526_v6 = vadd.f32 %v525_v4, %v524_v2  ;;  %1031 = vmatprep.subr.bf16.mxu1 %v1328_v46 }
 0x18b   : > { %v518_v7 = vadd.f32 %v517_v5, %v516_v3  ;;  %v527_v8 = vrot.slane %v526_v6, 1 }
 0x18c   : > { %1014 = vmatpush3.bf16.msra.mxu0 %v1150_v55  ;;  %1032 = vmatpush3.bf16.msra.mxu1 %v1157_v43 }
 0x18d   : > { %v519_v9 = vmul.f32 0.071428575, %v518_v7  ;;  %v528_v10 = vadd.f32 %v527_v8, %v526_v6  ;;  %1033 = vmatprep.subr.bf16.mxu1 %v1328_v46  ;;  %v695_v8 = vld [vmem:[%s1616_s3 + $0x2] sm:$0x1] }
 0x18f   : > { %v529_v11 = vmul.f32 0.071428575, %v528_v10  ;;  %v530_v12 = vmul.f32 %v519_v9, %v519_v9 }
 0x191   : > { %v531_v13 = vsub.f32 %v529_v11, %v530_v12  ;;  %v696_v11 = vld [vmem:[%s1616_s3 + $0x3] sm:$0x1] }
 0x193   : > { %v534_v14 = vadd.f32 1e-05, %v531_v13 }
 0x195   : > { %1159 = vrsqrt.f32 %v534_v14 }
 0x19f   : > { %v1160_v16 = vpop.eup %1159 }
 0x1a0   : > { %v536_v18 = vmul.f32 %v1160_v16, %v532_v17 }
 0x1a2   : > { %v543_v21 = vmul.f32 %v536_v18, %v519_v9  ;;  %v540_v23 = vrot.slane %v536_v18, %v1553_v20 }
 0x1a4   : > { %v544_v24 = vsub.f32 %v533_v22, %v543_v21  ;;  %v541_v25 = vmul.f32 %v540_v23, %v510_v56  ;;  %v542_v27 = vmul.f32 %v540_v23, %v511_v57 }
 0x1a6   : > { %v548_v26 = vrot.slane %v544_v24, %v1553_v20 }
 0x1a8   : > { %v549_v28 = vadd.f32 %v548_v26, %v541_v25  ;;  %v550_v30 = vadd.f32 %v548_v26, %v542_v27 }
 0x1ee   : > { %v556_v29 = vpop.permute.xlu0 %555 }
 0x1ef   : > { %v563_v31 = vmul.f32 %v556_v29, %v549_v28 }
 0x1f1   : > { %v565_v34 = vadd.f32 %v563_v31, %v1533_v44  ;;  %v1158_v44 = vld [vmem:[#allocation8 + $0xb8] sm:$0xff]  }
 0x1f2   : > { %v561_v32 = vpop.permute.xlu0 %560  ;;  %1034 = vmatpush3.bf16.msra.mxu1 %v1158_v44 }
 0x1f3   : > { %v564_v33 = vmul.f32 %v561_v32, %v550_v30 }
 0x1f5   : > { %v566_v35 = vadd.f32 %v564_v33, %v1537_v48 }
 0x1f7   : > { %v583_v36 = vpack.c.bf16 %v566_v35, %v565_v34 }
 0x1f9   : > { %1016 = vmatmul.mubr.bf16.vlgmr.msra.gmra.mrb[0].mxu0 %v583_v36 }
 0x2cc   : > { %v666_v45 = vpop.f32.mrb[0].mxu0 }
 0x2cd   : > { %v673_v47 = vmax.f32 %v666_v45, 0.0  ;;  %v1017_v48 = vpop.f32.mrb[1].mxu0 }
 0x2ce   : > { %v669_v49 = vpop.f32.mrb[2].mxu0 }
 0x2cf   : > { %v674_v50 = vmax.f32 %v669_v49, 0.0  ;;  %v1018_v51 = vpop.f32.mrb[3].mxu0  ;;  %v683_v52 = vmul.f32 %v673_v47, %v673_v47 }
 0x2d1   : > { %v675_v53 = vadd.f32 %v674_v50, %v673_v47  ;;  %v684_v54 = vmul.f32 %v674_v50, %v674_v50 }
 0x2d3   : > { %v676_v55 = vrot.slane %v675_v53, 4  ;;  %v685_v56 = vadd.f32 %v684_v54, %v683_v52 }
 0x2d5   : > { %v677_v57 = vadd.f32 %v676_v55, %v675_v53  ;;  %v686_v58 = vrot.slane %v685_v56, 4 }
 0x2d7   : > { %v678_v59 = vrot.slane %v677_v57, 2  ;;  %v687_v60 = vadd.f32 %v686_v58, %v685_v56 }
 0x2d9   : > { %v679_v61 = vadd.f32 %v678_v59, %v677_v57  ;;  %v688_v62 = vrot.slane %v687_v60, 2 }
 0x2db   : > { %v680_v63 = vrot.slane %v679_v61, 1  ;;  %v689_v46 = vadd.f32 %v688_v62, %v687_v60 }
 0x2dd   : > { %v681_v0 = vadd.f32 %v680_v63, %v679_v61  ;;  %v690_v1 = vrot.slane %v689_v46, 1 }
 0x2df   : > { %v682_v2 = vmul.f32 0.071428575, %v681_v0  ;;  %v691_v3 = vadd.f32 %v690_v1, %v689_v46 }
 0x2e1   : > { %v692_v4 = vmul.f32 0.071428575, %v691_v3  ;;  %v693_v5 = vmul.f32 %v682_v2, %v682_v2 }
 0x2e3   : > { %v694_v6 = vsub.f32 %v692_v4, %v693_v5 }
 0x2e5   : > { %v697_v7 = vadd.f32 1e-05, %v694_v6 }
 0x2e7   : > { %1161 = vrsqrt.f32 %v697_v7 }
 0x2f1   : > { %v1162_v9 = vpop.eup %1161 }
 0x2f2   : > { %v699_v10 = vmul.f32 %v1162_v9, %v695_v8 }
 0x2f4   : > { %v703_v12 = vrot.slane %v699_v10, %v1553_v20  ;;  %v706_v13 = vmul.f32 %v699_v10, %v682_v2 }
 0x2f6   : > { %v705_v14 = vmul.f32 %v703_v12, %v674_v50  ;;  %v704_v15 = vmul.f32 %v703_v12, %v673_v47  ;;  %v707_v16 = vsub.f32 %v696_v11, %v706_v13 }
 0x2f8   : > { %v711_v17 = vrot.slane %v707_v16, %v1553_v20 }
 0x2fa   : > { %v712_v18 = vadd.f32 %v711_v17, %v704_v15  ;;  %v713_v19 = vadd.f32 %v711_v17, %v705_v14 }
 0x2fc   : > { %v730_v21 = vpack.c.bf16 %v713_v19, %v712_v18 }
 0x2fe   : > { %1036 = vmatmul.mubr.bf16.vlgmr.msra.gmra.mrb[0].mxu1 %v730_v21 }
 0x3d1   : > { %v813_v22 = vpop.f32.mrb[0].mxu1 }
 0x3d2   : > { %820 = vst [vmem:[#allocation9] sm:$0xff] %v813_v22  ;;  %v1037_v23 = vpop.f32.mrb[1].mxu1 }
 0x3d3   : > { %v816_v24 = vpop.f32.mrb[2].mxu1 }
 0x3d4   : > { %821 = vst [vmem:[#allocation9 + $0x8] sm:$0xff] %v816_v24  ;;  %v1038_v25 = vpop.f32.mrb[3].mxu1 }
 0x3d5 PF: > { %p1085_p9 = scmp.eq.s32.totalorder %s1377_s19, 1  ;;  %s1330_s5 = smov [#allocation9]  }
 0x3d6   : > { %s828_s6 = sshll.u32 %s1330_s5, 4  ;;  %s829_s6 = int_to_ptr.vmem [resolvable:$true] %s828_s6 }
 0x3d7   : > { %s1249_s8 = scalar_lea.vmem %s829_s6, 256  ;;  %p1256_p8 = scmp.lt.s32.totalorder %s829_s6, %s829_s6 }
 0x3d8   : > { %p1250_p1 = scmp.ne.s32.totalorder %s829_s6, %s1249_s8  ;;  %p1257_p10 = scmp.lt.s32.totalorder %s1249_s8, %s1249_s8 }
 0x3da   : > { %p1251_p4 = pnand %p1250_p1, %p1085_p9  ;;  %p1258_p12 = por %p1257_p10, %p1256_p8 }
 0x3dc   : > { %p1252_p5 = pneg %p1251_p4 }
 0x3de   : > { %p1259_p0 = pnand %p1258_p12, %p1252_p5 }
 0x3e0   : > { %1262 = shalt.err (!%p1259_p0)
}
 0x3e1   : > { %s1263_s14 = scalar_lea.hbm %s1617_s4, 256 }
 0x3e2   : > { %p1264_p2 = scmp.ne.s32.totalorder %s1617_s4, %s1263_s14  ;;  %p1269_p3 = scmp.lt.u32.totalorder %s1263_s14, %s1617_s4 }
 0x3e4   : > { %p1265_p11 = pnand %p1264_p2, %p1085_p9 }
 0x3e6   : > { %p1266_p13 = pneg %p1265_p11 }
 0x3e8   : > { %p1271_p7 = pnand %p1269_p3, %p1266_p13 }
 0x3ea   : > { %1274 = shalt.err (!%p1271_p7)
}
 0x3eb   : > { %s1331_s23 = smov 128   ;;  %s1332_s20 = smov 8  }
 0x3ec   : > { %1066 = dma.vmem_to_hbm [thread:$0]  (%p1085_p9), %s829_s6, 256, %s1617_s4, [#allocation5], %s1331_s23, %s1331_s23, %s1332_s20  }
 0x3ed   : > { %1300 = dma.done.wait (%p1085_p9), [#allocation5], 256  }
 0x3ee   : > { %1302 = vsyncadd (%p1085_p9), [#allocation5], 4294967040 }
 0x3ef PF: > { %p16_p6 = scmp.ge.s32.totalorder %s1454_s7, 4   ;;  %s1629_s15 = smov %s1309_s16 }
 0x3f0   : > { %s1630_s16 = smov %s1313_s17  ;;  %s1631_s17 = smov %s1463_s12 }
 0x3f1   : > { %s1632_s18 = smov %s1454_s7  ;;  %18 = sbr.rel (!%p16_p6) target bundleno = 5 (0x5), region = 86 }
 0x3f8   :  { %844 = vsyncpa [#allocation4], 1 }
 0x3f9   :  { %846 = vsyncpa [#allocation4 + $0x1], 1 }
 0x3fa   :  { %847 = vsyncpa [#allocation7], 1 }
 0x3fb   :  { %848 = vsyncpa [#allocation5], 1 }
 0x3fc   :  { %850 = vsyncpa [#allocation5 + $0x1], 1 }

</bundles_post_ra>
